<compile_context>
chip_gen: v5e
topology: v5e:2x2
jax: 0.10.0
libtpu: 0.0.40
codegen_flags: <defaults>
</compile_context>

<pallas_src>
import jax
import jax.numpy as jnp
from jax.experimental import pallas as pl
from jax.experimental.pallas import tpu as pltpu  # noqa: F401  (kept for TPU-specific tuning)


def fc_silu_kernel(x_ref, w_ref, b_ref, o_ref):
    # x_ref: (M, K), w_ref: (K, N), b_ref: (1, N), o_ref: (M, N)
    acc = jnp.dot(x_ref[...], w_ref[...], preferred_element_type=jnp.float32)
    acc = acc + b_ref[...]                                  # bias broadcast over rows
    # SiLU(x) = x * sigmoid(x); exp + approx reciprocal both run on the EUP slot.
    sig = pl.reciprocal(1.0 + jnp.exp(-acc), approx=True)
    o_ref[...] = (acc * sig).astype(o_ref.dtype)


def third_place_landmarks_neck(x, w_t, b):
    """x: (M, K) f32; w_t: (K, N) f32 (transposed PyTorch Linear weight); b: (N,) f32."""
    M, K = x.shape
    K2, N = w_t.shape
    assert K == K2
    b2 = b.reshape(1, N).astype(jnp.float32)
    # Single program, full-array blocks resident in VMEM (no grid, no pipelining).
    return pl.pallas_call(
        fc_silu_kernel,
        out_shape=jax.ShapeDtypeStruct((M, N), x.dtype),
        in_specs=[
            pl.BlockSpec((M, K), lambda: (0, 0)),   # x: whole array
            pl.BlockSpec((K, N), lambda: (0, 0)),   # weight: whole array
            pl.BlockSpec((1, N), lambda: (0, 0)),   # bias: loaded once
        ],
        out_specs=pl.BlockSpec((M, N), lambda: (0, 0)),   # lane-dense full-width store
    )(x, w_t, b2)


if __name__ == "__main__":
    # Small shapes consistent with the module: Linear(in_channels -> out_channels=512)
    batch = 8
    in_channels = 32
    out_channels = 512

    key = jax.random.PRNGKey(0)
    kx, kw, kb = jax.random.split(key, 3)

    x = jax.random.normal(kx, (batch, in_channels), dtype=jnp.float32)
    # Deterministic synthetic parameter init.
    # TODO(synk): the PyTorch reset_parameters() applies weights_init_kaiming to a
    # nonexistent self.bn and would raise; plain deterministic init used instead.
    w = jax.random.normal(kw, (out_channels, in_channels), dtype=jnp.float32) * 0.02
    b = jax.random.normal(kb, (out_channels,), dtype=jnp.float32) * 0.01

    w_t = w.T  # (in_channels, out_channels)

    y = third_place_landmarks_neck(x, w_t, b)
    y = jax.block_until_ready(y)

    # Reference check in plain JAX (Linear + SiLU). Tolerance loosened slightly
    # because the kernel uses the EUP approximate reciprocal in the sigmoid.
    ref = x @ w_t + b[None, :]
    ref = ref * jax.nn.sigmoid(ref)
    assert y.shape == (batch, out_channels)
    assert jnp.allclose(y, ref, atol=2e-3, rtol=2e-3), float(jnp.max(jnp.abs(y - ref)))

    print("KERNEL_OK")
</pallas_src>

<mosaic_0001>
module attributes {stable_mosaic.version = 11 : i64} {
  func.func @fc_silu_kernel(%arg0: memref<8x32xf32, #tpu.memory_space<vmem>>, %arg1: memref<32x512xf32, #tpu.memory_space<vmem>>, %arg2: memref<1x512xf32, #tpu.memory_space<vmem>>, %arg3: memref<8x512xf32, #tpu.memory_space<vmem>>) attributes {dimension_semantics = [], scalar_prefetch = 0 : i64, scratch_operands = 0 : i64, tpu.core_type = #tpu.core_type<tc>} {
    %c0 = arith.constant 0 : index
    %c0_0 = arith.constant 0 : index
    %0 = vector.load %arg0[%c0, %c0_0] : memref<8x32xf32, #tpu.memory_space<vmem>>, vector<8x32xf32>
    %c0_1 = arith.constant 0 : index
    %c0_2 = arith.constant 0 : index
    %1 = vector.load %arg1[%c0_1, %c0_2] : memref<32x512xf32, #tpu.memory_space<vmem>>, vector<32x512xf32>
    %cst = arith.constant dense<0.000000e+00> : vector<8x512xf32>
    %2 = tpu.matmul %0, %1, %cst {dimension_numbers = #tpu.dot_dimension_numbers<[1], [0], [0], [1], [0, 0, 1, 1], [], []>} : vector<8x32xf32>, vector<32x512xf32>, vector<8x512xf32> -> vector<8x512xf32>
    %c0_3 = arith.constant 0 : index
    %c0_4 = arith.constant 0 : index
    %3 = vector.load %arg2[%c0_3, %c0_4] : memref<1x512xf32, #tpu.memory_space<vmem>>, vector<1x512xf32>
    %4 = vector.broadcast %3 : vector<1x512xf32> to vector<8x512xf32>
    %5 = arith.addf %2, %4 : vector<8x512xf32>
    %cst_5 = arith.constant 0.000000e+00 : f32
    %6 = vector.broadcast %cst_5 : f32 to vector<8x512xf32>
    %7 = arith.subf %6, %5 : vector<8x512xf32>
    %8 = math.exp %7 : vector<8x512xf32>
    %cst_6 = arith.constant 1.000000e+00 : f32
    %9 = vector.broadcast %cst_6 : f32 to vector<8x512xf32>
    %10 = arith.addf %9, %8 : vector<8x512xf32>
    %11 = tpu.reciprocal %10 {approx = true} : vector<8x512xf32> -> vector<8x512xf32>
    %12 = arith.mulf %5, %11 : vector<8x512xf32>
    %c0_7 = arith.constant 0 : index
    %c0_8 = arith.constant 0 : index
    %13 = vector.load %arg3[%c0_7, %c0_8] : memref<8x512xf32, #tpu.memory_space<vmem>>, vector<8x512xf32>
    tpu.vector_store %arg3[%c0_7, %c0_8], %12 {strides = array<i32>} : memref<8x512xf32, #tpu.memory_space<vmem>>, vector<8x512xf32>,
    return
  }
}

</mosaic_0001>

<bundles_post_ra>
// kernel: tpu_custom_call.1
= control target key start
LH: loop header
LB: loop body
LE: loop exit
PB: predicated region body
PF: predicated region fallthrough
CT: control target
= control target key end

     0   :  { %8 = vsyncpa [#allocation3], 0  ;;  %s381_s0 = inlined_call_operand.hbm [shape: f32[8,32], index: 0, kind: input, shape index: {}]   ;;  %s382_s1 = inlined_call_operand.hbm [shape: f32[32,512], index: 1, kind: input, shape index: {}]   ;;  %s383_s2 = inlined_call_operand.hbm [shape: f32[1,512], index: 2, kind: input, shape index: {}]   ;;  %s384_s3 = inlined_call_operand.hbm [shape: f32[8,512], index: 3, kind: output, shape index: {}]  }
   0x1   :  { %9 = vsyncpa [#allocation6], 0  ;;  %s26_s14 = sshll.u32 %s382_s1, 4  ;;  %s27_s14 = int_to_ptr.hbm [resolvable:$true] %s26_s14 }
   0x2   :  { %10 = vsyncpa [#allocation4], 0  ;;  %s343_s15 = smov [#allocation5]   ;;  %s16_s19 = sshll.u32 %s381_s0, 4  ;;  %s17_s19 = int_to_ptr.hbm [resolvable:$true] %s16_s19 }
   0x3   :  { %s28_s16 = sshll.u32 %s343_s15, 4  ;;  %s344_s20 = smov 512   ;;  %s29_s16 = int_to_ptr.vmem [resolvable:$true] %s28_s16 }
   0x4   :  { %s345_s21 = smov 32   ;;  %s346_s22 = smov [#allocation2]  }
   0x5   :  { %34 = dma.hbm_to_vmem [thread:$0]  %s27_s14, 2048, %s29_s16, [#allocation6], %s344_s20, %s344_s20, %s345_s21  }
   0x6   :  { %s18_s23 = sshll.u32 %s346_s22, 4  ;;  %s40_s26 = sshll.u32 %s383_s2, 4  ;;  %s19_s23 = int_to_ptr.vmem [resolvable:$true] %s18_s23  ;;  %s41_s26 = int_to_ptr.hbm [resolvable:$true] %s40_s26 }
   0x7   :  { %21 = dma.hbm_to_vmem [thread:$0]  %s17_s19, 128, %s19_s23, [#allocation3]  }
   0x8   :  { %s347_s1 = smov [#allocation7]  }
   0x9   :  { %s42_s27 = sshll.u32 %s347_s1, 4  ;;  %s43_s27 = int_to_ptr.vmem [resolvable:$true] %s42_s27 }
   0xa   :  { %45 = dma.hbm_to_vmem [thread:$0]  %s41_s26, 64, %s43_s27, [#allocation6]  }
   0xb   :  { %337 = dma.done.wait [#allocation3], 128  }
   0xc   :  { %338 = vsyncadd [#allocation3], 4294967168 }
   0xd   :  { %339 = dma.done.wait [#allocation6], 2112  }
   0xe   :  { %340 = vsyncadd [#allocation6], 4294965184  ;;  %v71_v0 = vld [vmem:[#allocation5 + $0x60] sm:$0xff]  ;;  %v72_v1 = vld [vmem:[#allocation5 + $0x68] sm:$0xff]  ;;  %vm85_vm0 = vcmask 261120   ;;  %s348_s0 = smov [#allocation8]  }
   0xf   :  { %v73_v2 = vld [vmem:[#allocation5 + $0x70] sm:$0xff]  ;;  %101 = vmatpush.msra.mxu0 %v71_v0  ;;  %121 = vmatpush.msra.mxu1 %v72_v1  ;;  %v74_v3 = vld [vmem:[#allocation5 + $0x78] sm:$0xff]  ;;  %v67_v4 = vld [vmem:[#allocation5 + $0x40] sm:$0xff]  ;;  %s202_s2 = sshll.u32 %s348_s0, 4  ;;  %s204_s30 = sshll.u32 %s384_s3, 4  ;;  %s203_s2 = int_to_ptr.vmem [resolvable:$true] %s202_s2  ;;  %s205_s30 = int_to_ptr.hbm [resolvable:$true] %s204_s30 }
  0x10   :  { %v68_v5 = vld [vmem:[#allocation5 + $0x48] sm:$0xff]  ;;  %141 = vmatpush.msra.mxu2 %v73_v2  ;;  %161 = vmatpush.msra.mxu3 %v74_v3  ;;  %v69_v6 = vld [vmem:[#allocation5 + $0x50] sm:$0xff]  ;;  %v70_v7 = vld [vmem:[#allocation5 + $0x58] sm:$0xff] }
  0x11   :  { %v63_v8 = vld [vmem:[#allocation5 + $0x20] sm:$0xff]  ;;  %102 = vmatpush.msra.mxu0 %v67_v4  ;;  %122 = vmatpush.msra.mxu1 %v68_v5  ;;  %v64_v9 = vld [vmem:[#allocation5 + $0x28] sm:$0xff]  ;;  %v65_v10 = vld [vmem:[#allocation5 + $0x30] sm:$0xff] }
  0x12   :  { %v66_v11 = vld [vmem:[#allocation5 + $0x38] sm:$0xff]  ;;  %142 = vmatpush.msra.mxu2 %v69_v6  ;;  %162 = vmatpush.msra.mxu3 %v70_v7  ;;  %v59_v12 = vld [vmem:[#allocation5] sm:$0xff]  ;;  %v60_v13 = vld [vmem:[#allocation5 + $0x8] sm:$0xff] }
  0x13   :  { %103 = vmatpush.msra.mxu0 %v63_v8  ;;  %123 = vmatpush.msra.mxu1 %v64_v9  ;;  %v61_v14 = vld [vmem:[#allocation5 + $0x10] sm:$0xff]  ;;  %v62_v15 = vld [vmem:[#allocation5 + $0x18] sm:$0xff]  ;;  %v75_v17 = vld [vmem:[#allocation7] sm:$0xf] }
  0x14   :  { %143 = vmatpush.msra.mxu2 %v65_v10  ;;  %163 = vmatpush.msra.mxu3 %v66_v11  ;;  %v58_v16 = vld [vmem:[#allocation2] sm:$0xff]  ;;  %v77_v18 = vperm.slane %v75_v17, 0  ;;  %v78_v19 = vperm.slane %v75_v17, 1  ;;  %v79_v26 = vperm.slane %v75_v17, 2  ;;  %v80_v27 = vperm.slane %v75_v17, 3 }
  0x15   :  { %104 = vmatpush.msra.mxu0 %v59_v12  ;;  %124 = vmatpush.msra.mxu1 %v60_v13 }
  0x16   :  { %144 = vmatpush.msra.mxu2 %v61_v14  ;;  %164 = vmatpush.msra.mxu3 %v62_v15 }
  0x17   :  { %215 = vmatmul.msk.f32.vlgmr.msra.gmra.mxu0 %vm85_vm0, %v58_v16  ;;  %216 = vmatmul.msk.f32.vlgmr.msra.gmra.mxu1 %vm85_vm0, %v58_v16 }
  0x18   :  { %217 = vmatmul.msk.f32.vlgmr.msra.gmra.mxu2 %vm85_vm0, %v58_v16  ;;  %218 = vmatmul.msk.f32.vlgmr.msra.gmra.mxu3 %vm85_vm0, %v58_v16 }
  0x94   :  { %v106_v20 = vpop.f32.mrf.mxu0  ;;  %v126_v21 = vpop.f32.mrf.mxu1 }
  0x95   :  { %v107_v22 = vadd.f32 %v106_v20, %v77_v18  ;;  %v127_v23 = vadd.f32 %v126_v21, %v78_v19 }
  0x97   :  { %v169_v24 = vsub.f32 0.0, %v107_v22  ;;  %v170_v25 = vsub.f32 0.0, %v127_v23 }
  0x99   :  { %v173_v28 = vmul.f32 1.442695, %v169_v24  ;;  %v175_v29 = vmul.f32 1.442695, %v170_v25 }
  0x9b   :  { %225 = vpow2.f32 %v173_v28  ;;  %v146_v30 = vpop.f32.mrf.mxu2  ;;  %v166_v31 = vpop.f32.mrf.mxu3 }
  0x9c   :  { %227 = vpow2.f32 %v175_v29  ;;  %v147_v32 = vadd.f32 %v146_v30, %v79_v26  ;;  %v167_v33 = vadd.f32 %v166_v31, %v80_v27 }
  0x9e   :  { %v171_v34 = vsub.f32 0.0, %v147_v32  ;;  %v172_v35 = vsub.f32 0.0, %v167_v33 }
  0xa0   :  { %v177_v36 = vmul.f32 1.442695, %v171_v34  ;;  %v179_v37 = vmul.f32 1.442695, %v172_v35 }
  0xa1   :  { %v226_v38 = vpop.eup %225 }
  0xa2   :  { %v228_v39 = vpop.eup %227  ;;  %v181_v40 = vadd.f32 1.0, %v226_v38  ;;  %229 = vpow2.f32 %v177_v36 }
  0xa3   :  { %v182_v41 = vadd.f32 1.0, %v228_v39  ;;  %231 = vpow2.f32 %v179_v37 }
  0xa4   :  { %233 = vrcp.f32 %v181_v40 }
  0xa5   :  { %235 = vrcp.f32 %v182_v41 }
  0xa8   :  { %v230_v42 = vpop.eup %229 }
  0xa9   :  { %v232_v43 = vpop.eup %231  ;;  %v183_v44 = vadd.f32 1.0, %v230_v42 }
  0xaa   :  { %v234_v45 = vpop.eup %233  ;;  %v184_v46 = vadd.f32 1.0, %v232_v43 }
  0xab   :  { %v236_v47 = vpop.eup %235  ;;  %v189_v48 = vmul.f32 %v234_v45, %v107_v22  ;;  %237 = vrcp.f32 %v183_v44 }
  0xac   :  { %v190_v49 = vmul.f32 %v236_v47, %v127_v23  ;;  %239 = vrcp.f32 %v184_v46 }
  0xad   :  { %193 = vst [vmem:[#allocation8] sm:$0xff] %v189_v48 }
  0xae   :  { %194 = vst [vmem:[#allocation8 + $0x8] sm:$0xff] %v190_v49 }
  0xb1   :  { %v238_v50 = vpop.eup %237 }
  0xb2   :  { %v240_v51 = vpop.eup %239  ;;  %v191_v52 = vmul.f32 %v238_v50, %v147_v32 }
  0xb3   :  { %v192_v53 = vmul.f32 %v240_v51, %v167_v33 }
  0xb4   :  { %195 = vst [vmem:[#allocation8 + $0x10] sm:$0xff] %v191_v52 }
  0xb5   :  { %196 = vst [vmem:[#allocation8 + $0x18] sm:$0xff] %v192_v53 }
  0xb6   :  { %207 = dma.vmem_to_hbm [thread:$0]  %s203_s2, 512, %s205_s30, [#allocation4]  }
  0xb7   :  { %341 = dma.done.wait [#allocation4], 512  }
  0xb8   :  { %342 = vsyncadd [#allocation4], 4294966784 }
  0xb9   :  { %212 = vsyncpa [#allocation3], 1 }
  0xba   :  { %213 = vsyncpa [#allocation6], 1 }
  0xbb   :  { %214 = vsyncpa [#allocation4], 1 }

</bundles_post_ra>
